<compile_context>
chip_gen: v7x
topology: tpu7x:2x2x1
jax: 0.10.0
libtpu: 0.0.40
codegen_flags: <defaults>
</compile_context>

<pallas_src>
import jax
import jax.numpy as jnp
from jax import lax
from jax.experimental import pallas as pl
from jax.experimental.pallas import tpu as pltpu

EPS = 1e-5   # nn.InstanceNorm2d default eps
K = 3        # kernel_size


def _shift_lanes(x, d):
    """Cyclic shift along the last (lane) axis: result[:, j] = x[:, (j + d) % n].

    `d` is static; this lowers to two static lane slices + a concat, which
    Mosaic turns into a lane rotation.
    """
    n = x.shape[-1]
    d = d % n
    if d == 0:
        return x
    return jnp.concatenate([x[:, d:], x[:, :d]], axis=1)


def _make_resblock_kernel(width):
    """width = W (image width); needed for the +/-W row shifts."""

    def kernel(x_ref, w1_ref, w2_ref, edges_ref, alpha_ref, out_ref):
        x = x_ref[0]                          # (C, H*W) f32, lane-dense
        hw = x.shape[1]
        inv_hw = jnp.float32(1.0 / hw)
        a = alpha_ref[0]                      # shared PReLU slope (SMEM scalar)

        edges = edges_ref[...]                # (4, H*W) f32 in {0,1}
        m_l = edges[0:1, :]                   # w == 0
        m_r = edges[1:2, :]                   # w == W-1
        m_t = edges[2:3, :]                   # h == 0
        m_b = edges[3:4, :]                   # h == H-1

        def clamp_shift(t, d, m):
            # Shift by d along the flattened spatial axis; where the cyclic
            # shift would wrap (mask m == 1) keep the original value, which is
            # exactly the edge-replicated (clamped) sample.
            r = _shift_lanes(t, d)
            return r + m * (t - r)

        def im2col(t):
            # (C, HW) -> (9*C, HW) replication-padded 3x3 patch slab.
            up = clamp_shift(t, -width, m_t)          # kh = 0
            dn = clamp_shift(t, +width, m_b)          # kh = 2
            taps = []
            for th in (up, t, dn):                    # kh = 0, 1, 2
                taps.append(clamp_shift(th, -1, m_l))  # kw = 0
                taps.append(th)                        # kw = 1
                taps.append(clamp_shift(th, +1, m_r))  # kw = 2
            return jnp.concatenate(taps, axis=0)

        def inst_norm(y):
            # One-pass stats: biased var = E[y^2] - E[y]^2 (matches torch IN).
            s = jnp.sum(y, axis=1, keepdims=True)
            ss = jnp.sum(y * y, axis=1, keepdims=True)
            mean = s * inv_hw
            var = ss * inv_hw - mean * mean
            return (y - mean) * lax.rsqrt(var + EPS)

        def prelu(y):
            return jnp.where(y >= 0, y, a * y)

        # stage 1: conv1 -> InstanceNorm -> PReLU   (conv bias cancels in IN)
        y = jnp.dot(w1_ref[...], im2col(x), preferred_element_type=jnp.float32)
        y = prelu(inst_norm(y))

        # stage 2: conv2 -> InstanceNorm -> +residual -> PReLU
        z = jnp.dot(w2_ref[...], im2col(y), preferred_element_type=jnp.float32)
        z = prelu(inst_norm(z) + x)

        out_ref[0] = z.astype(out_ref.dtype)

    return kernel


def residual_block(x, w1, b1, w2, b2, alpha):
    """x: (N, C, H, W) f32; w1/w2: (C_out, C_in, 3, 3); b1/b2: (C_out,)."""
    n, c, h, w = x.shape
    c_out = w1.shape[0]
    assert c_out == c, "residual add requires in_channels == out_channels"
    hw = h * w

    # Conv bias followed by InstanceNorm2d(affine=False) is a mathematical
    # no-op (removed by the mean subtraction); accepted for interface parity.
    del b1, b2

    # Repack weights so each conv is a single (C_out, 9*C) x (9*C, HW) matmul.
    # Column order (kh, kw, ci) -> tap*C + ci matches the im2col slab rows.
    w1r = jnp.transpose(w1, (0, 2, 3, 1)).reshape(c_out, K * K * c).astype(jnp.float32)
    w2r = jnp.transpose(w2, (0, 2, 3, 1)).reshape(c_out, K * K * c_out).astype(jnp.float32)
    a = jnp.reshape(alpha, (1,)).astype(jnp.float32)

    # Edge masks for in-kernel replication padding (tiny, shared by all steps).
    col = jnp.arange(hw, dtype=jnp.int32)
    wpos = col % w
    edges = jnp.stack(
        [wpos == 0, wpos == w - 1, col < w, col >= hw - w], axis=0
    ).astype(jnp.float32)                                   # (4, HW)

    xf = x.reshape(n, c, hw).astype(jnp.float32)            # free reshape (NCHW row-major)

    out = pl.pallas_call(
        _make_resblock_kernel(w),
        out_shape=jax.ShapeDtypeStruct((n, c_out, hw), jnp.float32),
        grid=(n,),
        in_specs=[
            pl.BlockSpec((1, c, hw), lambda i: (i, 0, 0)),          # activations
            pl.BlockSpec((c_out, K * K * c), lambda i: (0, 0)),     # conv1 weight
            pl.BlockSpec((c_out, K * K * c_out), lambda i: (0, 0)), # conv2 weight
            pl.BlockSpec((4, hw), lambda i: (0, 0)),                # edge masks
            pl.BlockSpec(memory_space=pltpu.MemorySpace.SMEM),      # PReLU slope
        ],
        out_specs=pl.BlockSpec((1, c_out, hw), lambda i: (i, 0, 0)),
        compiler_params=pltpu.CompilerParams(
            dimension_semantics=("parallel",),
            vmem_limit_bytes=32 * 1024 * 1024,
        ),
    )(xf, w1r, w2r, edges, a)

    return out.reshape(n, c_out, h, w)


def residual_block_ref(x, w1, b1, w2, b2, alpha):
    """Pure-JAX reference mirroring the PyTorch forward (bias included)."""
    def pad(t):
        return jnp.pad(t, ((0, 0), (0, 0), (1, 1), (1, 1)), mode="edge")

    def conv(t, wgt, bias):
        y = lax.conv_general_dilated(t, wgt, (1, 1), "VALID",
                                     dimension_numbers=("NCHW", "OIHW", "NCHW"))
        return y + bias[None, :, None, None]

    def inorm(t):
        m = t.mean(axis=(2, 3), keepdims=True)
        v = ((t - m) ** 2).mean(axis=(2, 3), keepdims=True)
        return (t - m) * lax.rsqrt(v + EPS)

    def prelu(t):
        return jnp.where(t >= 0, t, alpha * t)

    out = prelu(inorm(conv(pad(x), w1, b1)))
    out = inorm(conv(pad(out), w2, b2))
    return prelu(out + x)


if __name__ == "__main__":
    N, C, H, W = 2, 4, 16, 16   # in_channels == out_channels so residual adds
    key = jax.random.PRNGKey(0)
    kx, kw1, kb1, kw2, kb2 = jax.random.split(key, 5)

    x = jax.random.normal(kx, (N, C, H, W), jnp.float32)
    fan_in = C * K * K
    bound = 1.0 / (fan_in ** 0.5)
    w1 = jax.random.uniform(kw1, (C, C, K, K), jnp.float32, -bound, bound)
    b1 = jax.random.uniform(kb1, (C,), jnp.float32, -bound, bound)
    w2 = jax.random.uniform(kw2, (C, C, K, K), jnp.float32, -bound, bound)
    b2 = jax.random.uniform(kb2, (C,), jnp.float32, -bound, bound)
    alpha = jnp.float32(0.25)   # PReLU default init

    out = residual_block(x, w1, b1, w2, b2, alpha)
    out = jax.block_until_ready(out)

    ref = residual_block_ref(x, w1, b1, w2, b2, alpha)
    assert out.shape == (N, C, H, W)
    assert jnp.allclose(out, ref, atol=1e-4, rtol=1e-4), "mismatch vs reference"

    print("KERNEL_OK")
</pallas_src>

<mosaic_0001>
module attributes {stable_mosaic.version = 11 : i64} {
  func.func @kernel(%arg0: i32, %arg1: memref<1x4x256xf32, #tpu.memory_space<vmem>>, %arg2: memref<4x36xf32, #tpu.memory_space<vmem>>, %arg3: memref<4x36xf32, #tpu.memory_space<vmem>>, %arg4: memref<4x256xf32, #tpu.memory_space<vmem>>, %arg5: memref<1xf32, #tpu.memory_space<smem>>, %arg6: memref<1x4x256xf32, #tpu.memory_space<vmem>>) attributes {dimension_semantics = [#tpu.dimension_semantics<parallel>], iteration_bounds = array<i64: 2>, scalar_prefetch = 0 : i64, scratch_operands = 0 : i64, tpu.core_type = #tpu.core_type<tc>, window_params = [{transform_indices = @transform_0, window_bounds = array<i64: 1, 4, 256>}, {pipeline_mode = #tpu.pipeline_mode<synchronous>, transform_indices = @transform_1, window_bounds = array<i64: 4, 36>}, {pipeline_mode = #tpu.pipeline_mode<synchronous>, transform_indices = @transform_2, window_bounds = array<i64: 4, 36>}, {pipeline_mode = #tpu.pipeline_mode<synchronous>, transform_indices = @transform_3, window_bounds = array<i64: 4, 256>}, {transform_indices = @transform_4, window_bounds = array<i64: 1>}, {transform_indices = @transform_5, window_bounds = array<i64: 1, 4, 256>}]} {
    %c0 = arith.constant 0 : index
    %c0_0 = arith.constant 0 : index
    %c0_1 = arith.constant 0 : index
    %0 = vector.load %arg1[%c0, %c0_0, %c0_1] : memref<1x4x256xf32, #tpu.memory_space<vmem>>, vector<1x4x256xf32>
    %1 = vector.shape_cast %0 : vector<1x4x256xf32> to vector<4x256xf32>
    %c0_2 = arith.constant 0 : index
    %2 = memref.load %arg5[%c0_2] : memref<1xf32, #tpu.memory_space<smem>>
    %c0_3 = arith.constant 0 : index
    %c0_4 = arith.constant 0 : index
    %3 = vector.load %arg4[%c0_3, %c0_4] : memref<4x256xf32, #tpu.memory_space<vmem>>, vector<4x256xf32>
    %4 = vector.extract_strided_slice %3 {offsets = [0, 0], sizes = [1, 256], strides = [1, 1]} : vector<4x256xf32> to vector<1x256xf32>
    %5 = vector.extract_strided_slice %3 {offsets = [1, 0], sizes = [1, 256], strides = [1, 1]} : vector<4x256xf32> to vector<1x256xf32>
    %6 = vector.extract_strided_slice %3 {offsets = [2, 0], sizes = [1, 256], strides = [1, 1]} : vector<4x256xf32> to vector<1x256xf32>
    %7 = vector.extract_strided_slice %3 {offsets = [3, 0], sizes = [1, 256], strides = [1, 1]} : vector<4x256xf32> to vector<1x256xf32>
    %c0_5 = arith.constant 0 : index
    %c0_6 = arith.constant 0 : index
    %8 = vector.load %arg2[%c0_5, %c0_6] : memref<4x36xf32, #tpu.memory_space<vmem>>, vector<4x36xf32>
    %9 = vector.extract_strided_slice %1 {offsets = [0, 240], sizes = [4, 16], strides = [1, 1]} : vector<4x256xf32> to vector<4x16xf32>
    %10 = vector.extract_strided_slice %1 {offsets = [0, 0], sizes = [4, 240], strides = [1, 1]} : vector<4x256xf32> to vector<4x240xf32>
    %11 = tpu.concatenate %9, %10 in 1 : vector<4x16xf32>, vector<4x240xf32> -> vector<4x256xf32>
    %12 = arith.subf %1, %11 : vector<4x256xf32>
    %13 = vector.broadcast %6 : vector<1x256xf32> to vector<4x256xf32>
    %14 = arith.mulf %13, %12 : vector<4x256xf32>
    %15 = arith.addf %11, %14 : vector<4x256xf32>
    %16 = vector.extract_strided_slice %1 {offsets = [0, 16], sizes = [4, 240], strides = [1, 1]} : vector<4x256xf32> to vector<4x240xf32>
    %17 = vector.extract_strided_slice %1 {offsets = [0, 0], sizes = [4, 16], strides = [1, 1]} : vector<4x256xf32> to vector<4x16xf32>
    %18 = tpu.concatenate %16, %17 in 1 : vector<4x240xf32>, vector<4x16xf32> -> vector<4x256xf32>
    %19 = arith.subf %1, %18 : vector<4x256xf32>
    %20 = vector.broadcast %7 : vector<1x256xf32> to vector<4x256xf32>
    %21 = arith.mulf %20, %19 : vector<4x256xf32>
    %22 = arith.addf %18, %21 : vector<4x256xf32>
    %23 = vector.extract_strided_slice %15 {offsets = [0, 255], sizes = [4, 1], strides = [1, 1]} : vector<4x256xf32> to vector<4x1xf32>
    %24 = vector.extract_strided_slice %15 {offsets = [0, 0], sizes = [4, 255], strides = [1, 1]} : vector<4x256xf32> to vector<4x255xf32>
    %25 = tpu.concatenate %23, %24 in 1 : vector<4x1xf32>, vector<4x255xf32> -> vector<4x256xf32>
    %26 = arith.subf %15, %25 : vector<4x256xf32>
    %27 = vector.broadcast %4 : vector<1x256xf32> to vector<4x256xf32>
    %28 = arith.mulf %27, %26 : vector<4x256xf32>
    %29 = arith.addf %25, %28 : vector<4x256xf32>
    %30 = vector.extract_strided_slice %15 {offsets = [0, 1], sizes = [4, 255], strides = [1, 1]} : vector<4x256xf32> to vector<4x255xf32>
    %31 = vector.extract_strided_slice %15 {offsets = [0, 0], sizes = [4, 1], strides = [1, 1]} : vector<4x256xf32> to vector<4x1xf32>
    %32 = tpu.concatenate %30, %31 in 1 : vector<4x255xf32>, vector<4x1xf32> -> vector<4x256xf32>
    %33 = arith.subf %15, %32 : vector<4x256xf32>
    %34 = vector.broadcast %5 : vector<1x256xf32> to vector<4x256xf32>
    %35 = arith.mulf %34, %33 : vector<4x256xf32>
    %36 = arith.addf %32, %35 : vector<4x256xf32>
    %37 = vector.extract_strided_slice %1 {offsets = [0, 255], sizes = [4, 1], strides = [1, 1]} : vector<4x256xf32> to vector<4x1xf32>
    %38 = vector.extract_strided_slice %1 {offsets = [0, 0], sizes = [4, 255], strides = [1, 1]} : vector<4x256xf32> to vector<4x255xf32>
    %39 = tpu.concatenate %37, %38 in 1 : vector<4x1xf32>, vector<4x255xf32> -> vector<4x256xf32>
    %40 = arith.subf %1, %39 : vector<4x256xf32>
    %41 = vector.broadcast %4 : vector<1x256xf32> to vector<4x256xf32>
    %42 = arith.mulf %41, %40 : vector<4x256xf32>
    %43 = arith.addf %39, %42 : vector<4x256xf32>
    %44 = vector.extract_strided_slice %1 {offsets = [0, 1], sizes = [4, 255], strides = [1, 1]} : vector<4x256xf32> to vector<4x255xf32>
    %45 = vector.extract_strided_slice %1 {offsets = [0, 0], sizes = [4, 1], strides = [1, 1]} : vector<4x256xf32> to vector<4x1xf32>
    %46 = tpu.concatenate %44, %45 in 1 : vector<4x255xf32>, vector<4x1xf32> -> vector<4x256xf32>
    %47 = arith.subf %1, %46 : vector<4x256xf32>
    %48 = vector.broadcast %5 : vector<1x256xf32> to vector<4x256xf32>
    %49 = arith.mulf %48, %47 : vector<4x256xf32>
    %50 = arith.addf %46, %49 : vector<4x256xf32>
    %51 = vector.extract_strided_slice %22 {offsets = [0, 255], sizes = [4, 1], strides = [1, 1]} : vector<4x256xf32> to vector<4x1xf32>
    %52 = vector.extract_strided_slice %22 {offsets = [0, 0], sizes = [4, 255], strides = [1, 1]} : vector<4x256xf32> to vector<4x255xf32>
    %53 = tpu.concatenate %51, %52 in 1 : vector<4x1xf32>, vector<4x255xf32> -> vector<4x256xf32>
    %54 = arith.subf %22, %53 : vector<4x256xf32>
    %55 = vector.broadcast %4 : vector<1x256xf32> to vector<4x256xf32>
    %56 = arith.mulf %55, %54 : vector<4x256xf32>
    %57 = arith.addf %53, %56 : vector<4x256xf32>
    %58 = vector.extract_strided_slice %22 {offsets = [0, 1], sizes = [4, 255], strides = [1, 1]} : vector<4x256xf32> to vector<4x255xf32>
    %59 = vector.extract_strided_slice %22 {offsets = [0, 0], sizes = [4, 1], strides = [1, 1]} : vector<4x256xf32> to vector<4x1xf32>
    %60 = tpu.concatenate %58, %59 in 1 : vector<4x255xf32>, vector<4x1xf32> -> vector<4x256xf32>
    %61 = arith.subf %22, %60 : vector<4x256xf32>
    %62 = vector.broadcast %5 : vector<1x256xf32> to vector<4x256xf32>
    %63 = arith.mulf %62, %61 : vector<4x256xf32>
    %64 = arith.addf %60, %63 : vector<4x256xf32>
    %65 = tpu.concatenate %29, %15, %36, %43, %1, %50, %57, %22, %64 in 0 : vector<4x256xf32>, vector<4x256xf32>, vector<4x256xf32>, vector<4x256xf32>, vector<4x256xf32>, vector<4x256xf32>, vector<4x256xf32>, vector<4x256xf32>, vector<4x256xf32> -> vector<36x256xf32>
    %cst = arith.constant dense<0.000000e+00> : vector<4x256xf32>
    %66 = tpu.matmul %8, %65, %cst {dimension_numbers = #tpu.dot_dimension_numbers<[1], [0], [0], [1], [0, 0, 1, 1], [], []>} : vector<4x36xf32>, vector<36x256xf32>, vector<4x256xf32> -> vector<4x256xf32>
    %cst_7 = arith.constant dense<0.000000e+00> : vector<4xf32>
    %67 = vector.multi_reduction <add>, %66, %cst_7 [1] : vector<4x256xf32> to vector<4xf32>
    %68 = vector.shape_cast %67 : vector<4xf32> to vector<4x1xf32>
    %69 = arith.mulf %66, %66 : vector<4x256xf32>
    %cst_8 = arith.constant dense<0.000000e+00> : vector<4xf32>
    %70 = vector.multi_reduction <add>, %69, %cst_8 [1] : vector<4x256xf32> to vector<4xf32>
    %71 = vector.shape_cast %70 : vector<4xf32> to vector<4x1xf32>
    %cst_9 = arith.constant 3.906250e-03 : f32
    %72 = vector.broadcast %cst_9 : f32 to vector<4x1xf32>
    %73 = arith.mulf %68, %72 : vector<4x1xf32>
    %cst_10 = arith.constant 3.906250e-03 : f32
    %74 = vector.broadcast %cst_10 : f32 to vector<4x1xf32>
    %75 = arith.mulf %71, %74 : vector<4x1xf32>
    %76 = arith.mulf %73, %73 : vector<4x1xf32>
    %77 = arith.subf %75, %76 : vector<4x1xf32>
    %78 = vector.broadcast %73 : vector<4x1xf32> to vector<4x256xf32>
    %79 = arith.subf %66, %78 : vector<4x256xf32>
    %cst_11 = arith.constant 9.99999974E-6 : f32
    %80 = vector.broadcast %cst_11 : f32 to vector<4x1xf32>
    %81 = arith.addf %77, %80 : vector<4x1xf32>
    %82 = math.rsqrt %81 : vector<4x1xf32>
    %83 = vector.broadcast %82 : vector<4x1xf32> to vector<4x256xf32>
    %84 = arith.mulf %79, %83 : vector<4x256xf32>
    %cst_12 = arith.constant 0.000000e+00 : f32
    %85 = vector.broadcast %cst_12 : f32 to vector<4x256xf32>
    %86 = arith.cmpf oge, %84, %85 : vector<4x256xf32>
    %87 = vector.broadcast %2 : f32 to vector<4x256xf32>
    %88 = arith.mulf %87, %84 : vector<4x256xf32>
    %89 = arith.select %86, %84, %88 : vector<4x256xi1>, vector<4x256xf32>
    %c0_13 = arith.constant 0 : index
    %c0_14 = arith.constant 0 : index
    %90 = vector.load %arg3[%c0_13, %c0_14] : memref<4x36xf32, #tpu.memory_space<vmem>>, vector<4x36xf32>
    %91 = vector.extract_strided_slice %89 {offsets = [0, 240], sizes = [4, 16], strides = [1, 1]} : vector<4x256xf32> to vector<4x16xf32>
    %92 = vector.extract_strided_slice %89 {offsets = [0, 0], sizes = [4, 240], strides = [1, 1]} : vector<4x256xf32> to vector<4x240xf32>
    %93 = tpu.concatenate %91, %92 in 1 : vector<4x16xf32>, vector<4x240xf32> -> vector<4x256xf32>
    %94 = arith.subf %89, %93 : vector<4x256xf32>
    %95 = vector.broadcast %6 : vector<1x256xf32> to vector<4x256xf32>
    %96 = arith.mulf %95, %94 : vector<4x256xf32>
    %97 = arith.addf %93, %96 : vector<4x256xf32>
    %98 = vector.extract_strided_slice %89 {offsets = [0, 16], sizes = [4, 240], strides = [1, 1]} : vector<4x256xf32> to vector<4x240xf32>
    %99 = vector.extract_strided_slice %89 {offsets = [0, 0], sizes = [4, 16], strides = [1, 1]} : vector<4x256xf32> to vector<4x16xf32>
    %100 = tpu.concatenate %98, %99 in 1 : vector<4x240xf32>, vector<4x16xf32> -> vector<4x256xf32>
    %101 = arith.subf %89, %100 : vector<4x256xf32>
    %102 = vector.broadcast %7 : vector<1x256xf32> to vector<4x256xf32>
    %103 = arith.mulf %102, %101 : vector<4x256xf32>
    %104 = arith.addf %100, %103 : vector<4x256xf32>
    %105 = vector.extract_strided_slice %97 {offsets = [0, 255], sizes = [4, 1], strides = [1, 1]} : vector<4x256xf32> to vector<4x1xf32>
    %106 = vector.extract_strided_slice %97 {offsets = [0, 0], sizes = [4, 255], strides = [1, 1]} : vector<4x256xf32> to vector<4x255xf32>
    %107 = tpu.concatenate %105, %106 in 1 : vector<4x1xf32>, vector<4x255xf32> -> vector<4x256xf32>
    %108 = arith.subf %97, %107 : vector<4x256xf32>
    %109 = vector.broadcast %4 : vector<1x256xf32> to vector<4x256xf32>
    %110 = arith.mulf %109, %108 : vector<4x256xf32>
    %111 = arith.addf %107, %110 : vector<4x256xf32>
    %112 = vector.extract_strided_slice %97 {offsets = [0, 1], sizes = [4, 255], strides = [1, 1]} : vector<4x256xf32> to vector<4x255xf32>
    %113 = vector.extract_strided_slice %97 {offsets = [0, 0], sizes = [4, 1], strides = [1, 1]} : vector<4x256xf32> to vector<4x1xf32>
    %114 = tpu.concatenate %112, %113 in 1 : vector<4x255xf32>, vector<4x1xf32> -> vector<4x256xf32>
    %115 = arith.subf %97, %114 : vector<4x256xf32>
    %116 = vector.broadcast %5 : vector<1x256xf32> to vector<4x256xf32>
    %117 = arith.mulf %116, %115 : vector<4x256xf32>
    %118 = arith.addf %114, %117 : vector<4x256xf32>
    %119 = vector.extract_strided_slice %89 {offsets = [0, 255], sizes = [4, 1], strides = [1, 1]} : vector<4x256xf32> to vector<4x1xf32>
    %120 = vector.extract_strided_slice %89 {offsets = [0, 0], sizes = [4, 255], strides = [1, 1]} : vector<4x256xf32> to vector<4x255xf32>
    %121 = tpu.concatenate %119, %120 in 1 : vector<4x1xf32>, vector<4x255xf32> -> vector<4x256xf32>
    %122 = arith.subf %89, %121 : vector<4x256xf32>
    %123 = vector.broadcast %4 : vector<1x256xf32> to vector<4x256xf32>
    %124 = arith.mulf %123, %122 : vector<4x256xf32>
    %125 = arith.addf %121, %124 : vector<4x256xf32>
    %126 = vector.extract_strided_slice %89 {offsets = [0, 1], sizes = [4, 255], strides = [1, 1]} : vector<4x256xf32> to vector<4x255xf32>
    %127 = vector.extract_strided_slice %89 {offsets = [0, 0], sizes = [4, 1], strides = [1, 1]} : vector<4x256xf32> to vector<4x1xf32>
    %128 = tpu.concatenate %126, %127 in 1 : vector<4x255xf32>, vector<4x1xf32> -> vector<4x256xf32>
    %129 = arith.subf %89, %128 : vector<4x256xf32>
    %130 = vector.broadcast %5 : vector<1x256xf32> to vector<4x256xf32>
    %131 = arith.mulf %130, %129 : vector<4x256xf32>
    %132 = arith.addf %128, %131 : vector<4x256xf32>
    %133 = vector.extract_strided_slice %104 {offsets = [0, 255], sizes = [4, 1], strides = [1, 1]} : vector<4x256xf32> to vector<4x1xf32>
    %134 = vector.extract_strided_slice %104 {offsets = [0, 0], sizes = [4, 255], strides = [1, 1]} : vector<4x256xf32> to vector<4x255xf32>
    %135 = tpu.concatenate %133, %134 in 1 : vector<4x1xf32>, vector<4x255xf32> -> vector<4x256xf32>
    %136 = arith.subf %104, %135 : vector<4x256xf32>
    %137 = vector.broadcast %4 : vector<1x256xf32> to vector<4x256xf32>
    %138 = arith.mulf %137, %136 : vector<4x256xf32>
    %139 = arith.addf %135, %138 : vector<4x256xf32>
    %140 = vector.extract_strided_slice %104 {offsets = [0, 1], sizes = [4, 255], strides = [1, 1]} : vector<4x256xf32> to vector<4x255xf32>
    %141 = vector.extract_strided_slice %104 {offsets = [0, 0], sizes = [4, 1], strides = [1, 1]} : vector<4x256xf32> to vector<4x1xf32>
    %142 = tpu.concatenate %140, %141 in 1 : vector<4x255xf32>, vector<4x1xf32> -> vector<4x256xf32>
    %143 = arith.subf %104, %142 : vector<4x256xf32>
    %144 = vector.broadcast %5 : vector<1x256xf32> to vector<4x256xf32>
    %145 = arith.mulf %144, %143 : vector<4x256xf32>
    %146 = arith.addf %142, %145 : vector<4x256xf32>
    %147 = tpu.concatenate %111, %97, %118, %125, %89, %132, %139, %104, %146 in 0 : vector<4x256xf32>, vector<4x256xf32>, vector<4x256xf32>, vector<4x256xf32>, vector<4x256xf32>, vector<4x256xf32>, vector<4x256xf32>, vector<4x256xf32>, vector<4x256xf32> -> vector<36x256xf32>
    %cst_15 = arith.constant dense<0.000000e+00> : vector<4x256xf32>
    %148 = tpu.matmul %90, %147, %cst_15 {dimension_numbers = #tpu.dot_dimension_numbers<[1], [0], [0], [1], [0, 0, 1, 1], [], []>} : vector<4x36xf32>, vector<36x256xf32>, vector<4x256xf32> -> vector<4x256xf32>
    %cst_16 = arith.constant dense<0.000000e+00> : vector<4xf32>
    %149 = vector.multi_reduction <add>, %148, %cst_16 [1] : vector<4x256xf32> to vector<4xf32>
    %150 = vector.shape_cast %149 : vector<4xf32> to vector<4x1xf32>
    %151 = arith.mulf %148, %148 : vector<4x256xf32>
    %cst_17 = arith.constant dense<0.000000e+00> : vector<4xf32>
    %152 = vector.multi_reduction <add>, %151, %cst_17 [1] : vector<4x256xf32> to vector<4xf32>
    %153 = vector.shape_cast %152 : vector<4xf32> to vector<4x1xf32>
    %cst_18 = arith.constant 3.906250e-03 : f32
    %154 = vector.broadcast %cst_18 : f32 to vector<4x1xf32>
    %155 = arith.mulf %150, %154 : vector<4x1xf32>
    %cst_19 = arith.constant 3.906250e-03 : f32
    %156 = vector.broadcast %cst_19 : f32 to vector<4x1xf32>
    %157 = arith.mulf %153, %156 : vector<4x1xf32>
    %158 = arith.mulf %155, %155 : vector<4x1xf32>
    %159 = arith.subf %157, %158 : vector<4x1xf32>
    %160 = vector.broadcast %155 : vector<4x1xf32> to vector<4x256xf32>
    %161 = arith.subf %148, %160 : vector<4x256xf32>
    %cst_20 = arith.constant 9.99999974E-6 : f32
    %162 = vector.broadcast %cst_20 : f32 to vector<4x1xf32>
    %163 = arith.addf %159, %162 : vector<4x1xf32>
    %164 = math.rsqrt %163 : vector<4x1xf32>
    %165 = vector.broadcast %164 : vector<4x1xf32> to vector<4x256xf32>
    %166 = arith.mulf %161, %165 : vector<4x256xf32>
    %167 = arith.addf %166, %1 : vector<4x256xf32>
    %cst_21 = arith.constant 0.000000e+00 : f32
    %168 = vector.broadcast %cst_21 : f32 to vector<4x256xf32>
    %169 = arith.cmpf oge, %167, %168 : vector<4x256xf32>
    %170 = vector.broadcast %2 : f32 to vector<4x256xf32>
    %171 = arith.mulf %170, %167 : vector<4x256xf32>
    %172 = arith.select %169, %167, %171 : vector<4x256xi1>, vector<4x256xf32>
    %c0_22 = arith.constant 0 : index
    %c0_23 = arith.constant 0 : index
    %c0_24 = arith.constant 0 : index
    %173 = vector.load %arg6[%c0_22, %c0_23, %c0_24] : memref<1x4x256xf32, #tpu.memory_space<vmem>>, vector<1x4x256xf32>
    %174 = vector.shape_cast %173 : vector<1x4x256xf32> to vector<4x256xf32>
    %175 = vector.shape_cast %172 : vector<4x256xf32> to vector<1x4x256xf32>
    tpu.vector_store %arg6[%c0_22, %c0_23, %c0_24], %175 {strides = array<i32>} : memref<1x4x256xf32, #tpu.memory_space<vmem>>, vector<1x4x256xf32>,
    return
  }
  func.func @transform_0(%arg0: i32) -> (i32, i32, i32) {
    %c0_i32 = arith.constant 0 : i32
    %c0_i32_0 = arith.constant 0 : i32
    %c0_i32_1 = arith.constant 0 : i32
    return %arg0, %c0_i32, %c0_i32_0 : i32, i32, i32
  }
  func.func @transform_1(%arg0: i32) -> (i32, i32) {
    %c0_i32 = arith.constant 0 : i32
    %c0_i32_0 = arith.constant 0 : i32
    %c0_i32_1 = arith.constant 0 : i32
    return %c0_i32, %c0_i32_0 : i32, i32
  }
  func.func @transform_2(%arg0: i32) -> (i32, i32) {
    %c0_i32 = arith.constant 0 : i32
    %c0_i32_0 = arith.constant 0 : i32
    %c0_i32_1 = arith.constant 0 : i32
    return %c0_i32, %c0_i32_0 : i32, i32
  }
  func.func @transform_3(%arg0: i32) -> (i32, i32) {
    %c0_i32 = arith.constant 0 : i32
    %c0_i32_0 = arith.constant 0 : i32
    %c0_i32_1 = arith.constant 0 : i32
    return %c0_i32, %c0_i32_0 : i32, i32
  }
  func.func @transform_4(%arg0: i32) -> i32 {
    %c0_i32 = arith.constant 0 : i32
    %c0_i32_0 = arith.constant 0 : i32
    return %c0_i32 : i32
  }
  func.func @transform_5(%arg0: i32) -> (i32, i32, i32) {
    %c0_i32 = arith.constant 0 : i32
    %c0_i32_0 = arith.constant 0 : i32
    %c0_i32_1 = arith.constant 0 : i32
    return %arg0, %c0_i32, %c0_i32_0 : i32, i32, i32
  }
}

</mosaic_0001>

<bundles_post_ra>
// kernel: tpu_custom_call.1
= control target key start
LH: loop header
LB: loop body
LE: loop exit
PB: predicated region body
PF: predicated region fallthrough
CT: control target
= control target key end

     0   :  { %s1724_s0 = inlined_call_operand.hbm [shape: f32[2,4,256], index: 0, kind: input, shape index: {}]   ;;  %s1725_s1 = inlined_call_operand.vmem [shape: f32[4,36], index: 1, kind: input, shape index: {}]   ;;  %s1726_s2 = inlined_call_operand.hbm [shape: f32[4,36], index: 2, kind: input, shape index: {}]   ;;  %s1727_s3 = inlined_call_operand.vmem [shape: f32[4,256], index: 3, kind: input, shape index: {}]   ;;  %s1728_s4 = inlined_call_operand.<no memory space> [shape: f32[1], index: 4, kind: input, shape index: {}]   ;;  %s1729_s5 = inlined_call_operand.hbm [shape: f32[2,4,256], index: 5, kind: output, shape index: {}]  }
   0x1   :  { %10 = sst [smem:[#allocation2]] %s1728_s4 }
   0x2   :  { %11 = vsyncpa [#allocation4], 0 }
   0x3   :  { %13 = vsyncpa [#allocation4 + $0x1], 0 }
   0x4   :  { %14 = vsyncpa [#allocation7], 0 }
   0x5   :  { %15 = vsyncpa [#allocation5], 0 }
   0x6   :  { %17 = vsyncpa [#allocation5 + $0x1], 0  ;;  %s1265_s20 = smov 0   ;;  %s1267_s21 = smov 0  }
   0x7   :  { %s1269_s22 = smov 0   ;;  %s1271_s23 = smov 0  }
   0x8 LB: > { %s1286_s4 = sadd.s32 4294967295, %s1222_s23   ;;  %s987_s24 = sadd.s32 4294967294, %s1222_s23   ;;  %s1222_s23 = sphi %s1271_s23, %s1753_s23   ;;  %s1218_s22 = sphi %s1269_s22, %s1752_s22   ;;  %s1214_s21 = sphi %s1267_s21, %s1751_s21   ;;  %s1210_s20 = sphi %s1265_s20, %s1750_s20  }
   0x9   : > { %p43_p0 = scmp.ne.s32.totalorder %s1214_s21, %s1210_s20  ;;  %p1730_p1 = scmp.eq.s32.totalorder %s1286_s4, 0 }
   0xa   : > { %p157_p3 = scmp.eq.s32.totalorder %s987_s24, 1  ;;  %p988_p5 = scmp.ge.s32.totalorder %s1222_s23, 1 }
   0xb   : > { %p1295_p4 = por %p1730_p1, %p43_p0  ;;  %p164_p7 = scmp.lt.s32.totalorder %s1222_s23, 3 }
   0xc   : > { %p1300_p6 = por %p157_p3, %p43_p0  ;;  %s1224_s28 = smov [#allocation6]  }
   0xd   : > { %s1733_s25 = scalar_select %p1295_p4, 1, 0 }
   0xe   : > { %s1734_s26 = scalar_select %p1300_p6, 1, 0 }
   0xf   : > { %p1305_p8 = pnand %p988_p5, %p164_p7  ;;  %s180_s29 = sshll.u32 %s1224_s28, 4  ;;  %s181_s29 = int_to_ptr.vmem [resolvable:$true] %s180_s29 }
  0x10   : > { %s1313_s30 = sadd.s32 1, %s1222_s23   ;;  %s30_s9 = sadd.s32 1, %s1218_s22 }
  0x11   : > { %s1735_s27 = scalar_select %p1305_p8, 1, 0 }
  0x12   : > { %p1035_p10 = pneg %p1305_p8  ;;  %s27_s7 = ssub.s32 %s1222_s23, %s1313_s30 }
  0x13   : > { %p1323_p12 = scmp.eq.s32.totalorder %s27_s7, 0  ;;  %s1094_s12 = scalar_lea.hbm %s1726_s2, 64 }
  0x14   : > { %p1317_p11 = pnand %p1035_p10, %p1730_p1  ;;  %p1095_p0 = scmp.ne.s32.totalorder %s1726_s2, %s1094_s12 }
  0x15   : > { %s1737_s8 = scalar_select %p1323_p12, 1, 0 }
  0x16   : > { %p1096_p3 = pneg %p1317_p11  ;;  %p1101_p10 = scmp.lt.u32.totalorder %s1094_s12, %s1726_s2 }
  0x18   : > { %p1097_p5 = pnand %p1096_p3, %p1095_p0 }
  0x1a   : > { %p1098_p7 = pneg %p1097_p5 }
  0x1c   : > { %p1103_p9 = pnand %p1101_p10, %p1098_p7 }
  0x1e   : > { %1106 = shalt.err (!%p1103_p9)
}
  0x1f   : > { %s1107_s17 = scalar_lea.vmem %s181_s29, 64  ;;  %p1115_p6 = scmp.lt.s32.totalorder %s181_s29, %s181_s29 }
  0x20   : > { %p1108_p1 = scmp.ne.s32.totalorder %s181_s29, %s1107_s17  ;;  %p1116_p4 = scmp.lt.s32.totalorder %s1107_s17, %s1107_s17 }
  0x22   : > { %p1110_p2 = pnand %p1108_p1, %p1096_p3  ;;  %p1117_p8 = por %p1116_p4, %p1115_p6 }
  0x24   : > { %p1111_p13 = pneg %p1110_p2 }
  0x26   : > { %p1118_p12 = pnand %p1117_p8, %p1111_p13 }
  0x28   : > { %1121 = shalt.err (!%p1118_p12)
}
  0x29   : > { %1038 = dma.hbm_to_vmem [thread:$0]  (!%p1317_p11), %s1726_s2, 64, %s181_s29, [#allocation7]  }
  0x2a   : > { %p1738_p1 = scmp.ne.s32.totalorder %s1737_s8, 0  ;;  %p38_p2 = scmp.eq.s32.totalorder %s1222_s23, 0 }
  0x2b   : > { %p1739_p4 = scmp.ne.s32.totalorder %s1218_s22, %s1214_s21  ;;  %p1740_p6 = scmp.eq.s32.totalorder %s1286_s4, 1 }
  0x2c   : > { %s1349_s24 = scalar_select %p1738_p1, %s1218_s22, %s30_s9  }
  0x2d   : > { %p1357_p8 = por %p1740_p6, %p1739_p4  ;;  %p1048_p9 = scmp.lt.s32.totalorder %s1222_s23, 2 }
  0x2e   : > { %s197_s6 = sand.u32 1, %s1218_s22   ;;  %p1742_p12 = pmov %p1739_p4 }
  0x2f   : > { %s991_s7 = sshll.u32 %s197_s6, 3  ;;  %s1009_s10 = sshll.u32 %s1222_s23, 7 }
  0x30   : > { %p39_p13 = por %p38_p2, %p1742_p12  ;;  %s1370_s29 = scalar_lea.hbm %s1724_s0, %s1009_s10 }
  0x31   : > { %s201_s8 = scalar_lea.vmem [#allocation3], %s991_s7  ;;  %s198_s14 = scalar_lea.sflag [#allocation4], %s197_s6 }
  0x32   : > { %s209_s9 = sshll.u32 %s201_s8, 4  ;;  %p1372_p11 = pnand %p1048_p9, %p39_p13  ;;  %s1376_s9 = int_to_ptr.vmem [resolvable:$true] %s209_s9 }
  0x33   : > { %s1122_s15 = scalar_lea.hbm %s1370_s29, 128  ;;  %s1127_s18 = scalar_lea.hbm %s1724_s0, 256 }
  0x34   : > { %p1123_p0 = scmp.ne.s32.totalorder %s1370_s29, %s1122_s15  ;;  %p1124_p3 = pneg %p1372_p11 }
  0x35   : > { %p1128_p10 = scmp.lt.u32.totalorder %s1370_s29, %s1724_s0  ;;  %p1129_p1 = scmp.lt.u32.totalorder %s1127_s18, %s1122_s15 }
  0x36   : > { %p1125_p5 = pnand %p1124_p3, %p1123_p0  ;;  %p1131_p4 = scmp.lt.u32.totalorder %s1122_s15, %s1370_s29 }
  0x37   : > { %p1130_p2 = por %p1129_p1, %p1128_p10 }
  0x38   : > { %p1126_p7 = pneg %p1125_p5 }
  0x39   : > { %p1132_p6 = por %p1131_p4, %p1130_p2 }
  0x3b   : > { %p1133_p9 = pnand %p1132_p6, %p1126_p7 }
  0x3d   : > { %1136 = shalt.err (!%p1133_p9)
}
  0x3e   : > { %s1137_s6 = scalar_lea.vmem %s1376_s9, 128  ;;  %s1225_s10 = smov [#allocation3]  }
  0x3f   : > { %p1138_p12 = scmp.ne.s32.totalorder %s1376_s9, %s1137_s6  ;;  %s1142_s11 = sshll.u32 %s1225_s10, 4  ;;  %s1143_s11 = int_to_ptr.vmem [resolvable:$false] %s1142_s11 }
  0x40   : > { %s1144_s12 = scalar_lea.vmem %s1143_s11, 256  ;;  %p1145_p5 = scmp.lt.s32.totalorder %s1376_s9, %s1143_s11 }
  0x41   : > { %p1140_p13 = pnand %p1138_p12, %p1124_p3  ;;  %p1146_p10 = scmp.lt.s32.totalorder %s1144_s12, %s1137_s6 }
  0x43   : > { %p1141_p0 = pneg %p1140_p13  ;;  %p1147_p1 = por %p1146_p10, %p1145_p5 }
  0x45   : > { %p1148_p2 = pnand %p1147_p1, %p1141_p0 }
  0x47   : > { %1151 = shalt.err (!%p1148_p2)
}
  0x48   : > { %1042 = dma.hbm_to_vmem [thread:$0]  (!%p1372_p11), %s1370_s29, 128, %s1376_s9, %s198_s14  }
  0x49   : > { %p1744_p7 = scmp.ne.s32.totalorder %s1735_s27, 0 }
  0x4a   : > { %s1406_s8 = sand.u32 (!%p1744_p7), 1, %s1214_s21   ;;  %p1745_p3 = scmp.ne.s32.totalorder (!%p1744_p7), %s1733_s25, 0 }
  0x4b   : > { %218 = sbr.rel (%p1744_p7) target bundleno = 1400 (0x578), region = 40  ;;  %s995_s15 = sshll.u32 (!%p1744_p7), %s1406_s8, 3 }
  0x4c   : > { %s221_s16 = scalar_lea.sflag (!%p1744_p7), [#allocation4], %s1406_s8  ;;  %s224_s17 = scalar_lea.vmem (!%p1744_p7), [#allocation3], %s995_s15 }
  0x52   : > { %1197 = dma.done.wait (%p1745_p3), %s221_s16, 128  }
  0x53   : > { %1199 = vsyncadd (%p1745_p3), %s221_s16, 4294967168  ;;  %p1746_p11 = scmp.eq.s32.totalorder %s1286_s4, 0 }
  0x55   : > { %1201 = dma.done.wait (%p1746_p11), [#allocation7], 64   ;;  %p1747_p4 = pmov %p1746_p11 }
  0x56   : > { %v1420_v0 = vld [vmem:[%s224_s17] sm:$0xff]  ;;  %s1226_s27 = smov 112   ;;  %s1227_s29 = smov 16   ;;  %v276_v2 = vlaneseq  ;;  %vm305_vm0 = vcmask 916480   ;;  %vm266_vm1 = vcmask 130048   ;;  %v1230_v51 = vmov 0.0  }
  0x57   : > { %1203 = vsyncadd (%p1747_p4), [#allocation7], 4294967232  ;;  %301 = vrot.lane.b32.xlu1 %v1420_v0, %s1226_s27  ;;  %v1426_v1 = vcombine.high %v1420_v0, %v1420_v0  ;;  %s1228_s25 = smov 1   ;;  %s1229_s9 = smov 127   ;;  %v257_v6 = vld [vmem:[%s1727_s3] sm:$0xff]  ;;  %586 = vmatprep.mubr.f32.mxu0 %v1230_v51  ;;  %vm347_vm2 = vcmask 7168  }
  0x58   : > { %v277_v3 = vshrl.u32 %v276_v2, 7  ;;  %850 = vmatprep.mubr.f32.mxu1 %v1230_v51  ;;  %vm380_vm3 = vcmask 1039360   ;;  %vm503_vm4 = vcmask 1043456   ;;  %vm512_vm5 = vcmask 293888   ;;  %s256_s7 = sld [smem:[#allocation2]]  ;;  %s1010_s6 = sshll.u32 %s1286_s4, 7 }
  0x59   : > { %261 = vrot.lane.b32.xlu0 %v1426_v1, %s1227_s29  ;;  %s254_s10 = scalar_lea.vmem [#allocation8], %s995_s15  ;;  %s1680_s17 = scalar_lea.hbm %s1729_s5, %s1010_s6 }
  0x5a   : > { %v356_v4 = vsub.s32 0, %v277_v3  ;;  %v360_v5 = vsub.s32 4, %v277_v3  ;;  %v390_v7 = vsub.s32 1, %v277_v3  ;;  %v394_v8 = vsub.s32 5, %v277_v3  ;;  %s907_s11 = sshll.u32 %s254_s10, 4  ;;  %s1231_s4 = smov [#allocation8]   ;;  %s1682_s11 = int_to_ptr.vmem [resolvable:$true] %s907_s11 }
  0x5b   : > { %303 = vrot.lane.b32.xlu1 %v1426_v1, %s1226_s27  ;;  %v278_v18 = vsub.s32 2, %v277_v3  ;;  %v282_v20 = vsub.s32 6, %v277_v3  ;;  %v317_v23 = vsub.s32 3, %v277_v3  ;;  %v321_v26 = vsub.s32 7, %v277_v3  ;;  %s1156_s15 = sshll.u32 %s1231_s4, 4  ;;  %s1157_s15 = int_to_ptr.vmem [resolvable:$false] %s1156_s15 }
  0x5c   : > { %v357_v9 = vrot.slane %v257_v6, %v356_v4  ;;  %v361_v10 = vrot.slane %v257_v6, %v360_v5  ;;  %v391_v11 = vrot.slane %v257_v6, %v390_v7  ;;  %v395_v12 = vrot.slane %v257_v6, %v394_v8  ;;  %p1159_p13 = scmp.lt.s32.totalorder %s1682_s11, %s1157_s15 }
  0x5d   : > { %264 = vrot.lane.b32.xlu0 %v1420_v0, %s1227_s29  ;;  %v279_v22 = vrot.slane %v257_v6, %v278_v18  ;;  %v283_v28 = vrot.slane %v257_v6, %v282_v20  ;;  %v318_v34 = vrot.slane %v257_v6, %v317_v23  ;;  %v322_v35 = vrot.slane %v257_v6, %v321_v26 }
  0x5e   : > { %v1445_v13 = vrot.slane %v357_v9, %v356_v4  ;;  %v1447_v14 = vrot.slane %v361_v10, %v356_v4  ;;  %v1449_v15 = vrot.slane %v391_v11, %v390_v7  ;;  %v1451_v16 = vrot.slane %v395_v12, %v390_v7 }
  0x5f   : > { %413 = vrot.lane.b32.xlu1 %v1420_v0, %s1228_s25  ;;  %v1457_v32 = vrot.slane %v279_v22, %v278_v18  ;;  %v1460_v37 = vrot.slane %v283_v28, %v278_v18  ;;  %v1464_v41 = vrot.slane %v318_v34, %v317_v23  ;;  %v1466_v42 = vrot.slane %v322_v35, %v317_v23 }
  0x61   : > { %410 = vrot.lane.b32.xlu0 %v1426_v1, %s1228_s25 }
  0x63   : > { %432 = vrot.lane.b32.xlu1 %v1426_v1, %s1229_s9 }
  0x65   : > { %430 = vrot.lane.b32.xlu0 %v1420_v0, %s1229_s9 }
  0xc9   : > { %v302_v17 = vpop.permute.xlu1 %301 }
  0xcb   : > { %v262_v19 = vpop.permute.xlu0 %261 }
  0xcd   : > { %v304_v21 = vpop.permute.xlu1 %303 }
  0xce   : > { %v306_v24 = vsel %vm305_vm0, %v302_v17, %v304_v21  ;;  %v310_v25 = vsel %vm305_vm0, %v304_v21, %v302_v17 }
  0xcf   : > { %v312_v27 = vcombine.low %v306_v24, %v310_v25  ;;  %v265_v29 = vpop.permute.xlu0 %264 }
  0xd0   : > { %v267_v30 = vsel %vm266_vm1, %v265_v29, %v262_v19  ;;  %v270_v31 = vsel %vm266_vm1, %v262_v19, %v265_v29 }
  0xd1   : > { %v272_v33 = vcombine.low %v270_v31, %v267_v30  ;;  %v314_v36 = vsub.f32 %v1420_v0, %v312_v27  ;;  %v414_v52 = vpop.permute.xlu1 %413 }
  0xd3   : > { %v274_v38 = vsub.f32 %v1420_v0, %v272_v33  ;;  %v334_v43 = vcombine.high %v314_v36, %v314_v36  ;;  %v336_v46 = vmul.f32 %v1464_v41, %v314_v36  ;;  %v411_v53 = vpop.permute.xlu0 %410 }
  0xd4   : > { %v415_v54 = vsel %vm347_vm2, %v414_v52, %v411_v53  ;;  %v418_v55 = vsel %vm347_vm2, %v411_v53, %v414_v52 }
  0xd5   : > { %v295_v39 = vcombine.high %v274_v38, %v274_v38  ;;  %v297_v40 = vmul.f32 %v1457_v32, %v274_v38  ;;  %v337_v47 = vmul.f32 %v334_v43, %v1466_v42  ;;  %v1483_v49 = vadd.f32 %v336_v46, %v306_v24  ;;  %v433_v56 = vpop.permute.xlu1 %432 }
  0xd6   : > { %v420_v58 = vcombine.low %v418_v55, %v415_v54 }
  0xd7   : > { %v298_v44 = vmul.f32 %v295_v39, %v1460_v37  ;;  %v1469_v45 = vadd.f32 %v297_v40, %v270_v31  ;;  %v1485_v50 = vadd.f32 %v337_v47, %v310_v25  ;;  %v431_v57 = vpop.permute.xlu0 %430 }
  0xd8   : > { %v434_v59 = vsel %vm380_vm3, %v431_v57, %v433_v56  ;;  %v438_v60 = vsel %vm380_vm3, %v433_v56, %v431_v57  ;;  %v422_v62 = vsub.f32 %v1420_v0, %v420_v58 }
  0xd9   : > { %376 = vrot.lane.b32.xlu0 %v1469_v45, %s1229_s9  ;;  %345 = vrot.lane.b32.xlu1 %v1469_v45, %s1228_s25  ;;  %v1477_v48 = vadd.f32 %v298_v44, %v267_v30  ;;  %v440_v61 = vcombine.low %v434_v59, %v438_v60  ;;  %v482_v29 = vrot.slane %v1469_v45, 4 }
  0xda   : > { %v424_v2 = vcombine.high %v422_v62, %v422_v62  ;;  %v426_v4 = vmul.f32 %v422_v62, %v1445_v13 }
  0xdb   : > { %v442_v63 = vsub.f32 %v1420_v0, %v440_v61  ;;  %v483_v28 = vrot.slane %v1477_v48, 4 }
  0xdc   : > { %v427_v5 = vmul.f32 %v424_v2, %v1447_v14  ;;  %v428_v10 = vadd.f32 %v426_v4, %v418_v55 }
  0xdd   : > { %378 = vrot.lane.b32.xlu1 %v1477_v48, %s1229_s9  ;;  %341 = vrot.lane.b32.xlu0 %v1477_v48, %s1228_s25  ;;  %v444_v3 = vcombine.high %v442_v63, %v442_v63  ;;  %v446_v8 = vmul.f32 %v442_v63, %v1449_v15 }
  0xde   : > { %v429_v11 = vadd.f32 %v427_v5, %v415_v54  ;;  %v488_v38 = vrot.slane %v428_v10, 4  ;;  %v499_v5 = vrot.slane %v1483_v49, 4 }
  0xdf   : > { %v447_v9 = vmul.f32 %v444_v3, %v1451_v16  ;;  %v448_v26 = vadd.f32 %v446_v8, %v434_v59 }
  0xe0   : > { %v489_v39 = vrot.slane %v429_v11, 4 }
  0xe1   : > { %455 = vrot.lane.b32.xlu1 %v1483_v49, %s1228_s25  ;;  %451 = vrot.lane.b32.xlu0 %v1485_v50, %s1228_s25  ;;  %v449_v27 = vadd.f32 %v447_v9, %v438_v60  ;;  %v500_v9 = vrot.slane %v1485_v50, 4 }
  0xe3   : > { %v496_v51 = vrot.slane %v449_v27, 4 }
  0xe5   : > { %469 = vrot.lane.b32.xlu1 %v1485_v50, %s1229_s9  ;;  %467 = vrot.lane.b32.xlu0 %v1483_v49, %s1229_s9  ;;  %v509_v11 = vsel %vm503_vm4, %v1426_v1, %v496_v51 }
 0x14b   : > { %v346_v6 = vpop.permute.xlu1 %345  ;;  %v377_v7 = vpop.permute.xlu0 %376 }
 0x14f   : > { %v379_v12 = vpop.permute.xlu1 %378  ;;  %v342_v17 = vpop.permute.xlu0 %341 }
 0x150   : > { %v381_v18 = vsel %vm380_vm3, %v377_v7, %v379_v12  ;;  %v385_v19 = vsel %vm380_vm3, %v379_v12, %v377_v7  ;;  %v348_v20 = vsel %vm347_vm2, %v346_v6, %v342_v17  ;;  %v351_v21 = vsel %vm347_vm2, %v342_v17, %v346_v6 }
 0x151   : > { %v386_v22 = vsub.f32 %v1469_v45, %v381_v18  ;;  %v387_v23 = vsub.f32 %v1477_v48, %v385_v19  ;;  %v352_v24 = vsub.f32 %v1469_v45, %v351_v21  ;;  %v353_v25 = vsub.f32 %v1477_v48, %v348_v20 }
 0x152   : > { %v495_v48 = vrot.slane %v448_v26, 4 }
 0x153   : > { %v406_v30 = vmul.f32 %v1449_v15, %v386_v22  ;;  %v407_v31 = vmul.f32 %v1451_v16, %v387_v23  ;;  %v372_v33 = vmul.f32 %v1445_v13, %v352_v24  ;;  %v373_v34 = vmul.f32 %v1447_v14, %v353_v25  ;;  %v456_v35 = vpop.permute.xlu1 %455  ;;  %v452_v36 = vpop.permute.xlu0 %451  ;;  %v258_v22 = vld [vmem:[%s1725_s1] sm:$0xf] }
 0x154   : > { %v457_v40 = vsel %vm347_vm2, %v456_v35, %v452_v36  ;;  %v460_v43 = vsel %vm347_vm2, %v452_v36, %v456_v35  ;;  %v508_v17 = vsel %vm503_vm4, %v1420_v0, %v495_v48 }
 0x155   : > { %v408_v44 = vadd.f32 %v406_v30, %v381_v18  ;;  %v409_v46 = vadd.f32 %v407_v31, %v385_v19  ;;  %v374_v47 = vadd.f32 %v372_v33, %v351_v21  ;;  %v375_v45 = vadd.f32 %v373_v34, %v348_v20 }
 0x156   : > { %v461_v52 = vsub.f32 %v1483_v49, %v460_v43  ;;  %v462_v53 = vsub.f32 %v1485_v50, %v457_v40 }
 0x157   : > { %v470_v54 = vpop.permute.xlu1 %469  ;;  %v468_v55 = vpop.permute.xlu0 %467  ;;  %v505_v56 = vsel %vm503_vm4, %v375_v45, %v483_v28  ;;  %v507_v57 = vsel %vm503_vm4, %v409_v46, %v489_v39  ;;  %v504_v58 = vsel %vm503_vm4, %v374_v47, %v482_v29  ;;  %v506_v59 = vsel %vm503_vm4, %v408_v44, %v488_v38 }
 0x158   : > { %v463_v60 = vmul.f32 %v461_v52, %v1445_v13  ;;  %v464_v61 = vmul.f32 %v462_v53, %v1447_v14  ;;  %v471_v62 = vsel %vm380_vm3, %v468_v55, %v470_v54  ;;  %v475_v63 = vsel %vm380_vm3, %v470_v54, %v468_v55 }
 0x159   : > { %v477_v2 = vsub.f32 %v1485_v50, %v475_v63  ;;  %v1011_v3 = vpack.c.bf16 %v507_v57, %v505_v56  ;;  %v1013_v4 = vpack.c.bf16 %v506_v59, %v504_v58  ;;  %v476_v8 = vsub.f32 %v1483_v49, %v471_v62 }
 0x15a   : > { %v465_v6 = vadd.f32 %v463_v60, %v460_v43  ;;  %v466_v7 = vadd.f32 %v464_v61, %v457_v40  ;;  %v1553_v45 = vstv %s256_s7 }
 0x15b   : > { %v479_v10 = vmul.f32 %v477_v2, %v1451_v16  ;;  %1012 = vmatprep.subr.bf16.mxu0 %v1011_v3  ;;  %v478_v49 = vmul.f32 %v476_v8, %v1449_v15 }
 0x15c   : > { %1014 = vmatpush1.bf16.msra.mxu0 %v1013_v4  ;;  %v511_v12 = vsel %vm503_vm4, %v466_v7, %v500_v9  ;;  %v510_v18 = vsel %vm503_vm4, %v465_v6, %v499_v5 }
 0x15d   : > { %v481_v19 = vadd.f32 %v479_v10, %v475_v63  ;;  %v1015_v20 = vpack.c.bf16 %v511_v12, %v509_v11  ;;  %v1017_v21 = vpack.c.bf16 %v510_v18, %v508_v17  ;;  %v480_v50 = vadd.f32 %v478_v49, %v471_v62 }
 0x15f   : > { %1016 = vmatprep.subr.bf16.mxu0 %v1015_v20 }
 0x160   : > { %1018 = vmatpush1.bf16.msra.mxu0 %v1017_v21 }
 0x161   : > { %998 = vmatprep.subr.msk.mxu0 %vm503_vm4, %v481_v19 }
 0x164   : > { %999 = vmatpush1.msk.msra.mxu0 %vm503_vm4, %v480_v50 }
 0x165   : > { %1000 = vmatmul.mubr.msk.f32.vlgmr.msra.gmra.mrb[0].mxu0 %vm512_vm5, %v258_v22 }
 0x238   : > { %v588_v23 = vpop.f32.mrb[0].mxu0 }
 0x239   : > { %v598_v24 = vmul.f32 %v588_v23, %v588_v23  ;;  %v590_v25 = vpop.f32.mrb[1].mxu0  ;;  %v593_v26 = vsel %vm503_vm4, %v588_v23, 0.0 }
 0x23a   : > { %v594_v27 = vsel %vm503_vm4, %v590_v25, 0.0  ;;  %v599_v28 = vmul.f32 %v590_v25, %v590_v25 }
 0x23b   : > { %v595_v29 = vadd.f32 %v594_v27, %v593_v26  ;;  %v600_v30 = vsel %vm503_vm4, %v598_v24, 0.0 }
 0x23c   : > { %v601_v31 = vsel %vm503_vm4, %v599_v28, 0.0 }
 0x23d   : > { %596 = vadd.xlane.f32.xlu0 %v595_v29  ;;  %v602_v33 = vadd.f32 %v601_v31, %v600_v30 }
 0x23f   : > { %603 = vadd.xlane.f32.xlu1 %v602_v33 }
 0x2ca   : > { %v597_v34 = vpop.xlane.xlu0 %596 }
 0x2cb   : > { %v605_v35 = vmul.f32 0.00390625, %v597_v34 }
 0x2cc   : > { %v604_v36 = vpop.xlane.xlu1 %603 }
 0x2cd   : > { %v606_v38 = vmul.f32 0.00390625, %v604_v36  ;;  %v607_v39 = vmul.f32 %v605_v35, %v605_v35  ;;  %v609_v44 = vsub.f32 %v588_v23, %v605_v35  ;;  %v610_v46 = vsub.f32 %v590_v25, %v605_v35 }
 0x2cf   : > { %v608_v40 = vsub.f32 %v606_v38, %v607_v39 }
 0x2d1   : > { %v611_v43 = vadd.f32 1e-05, %v608_v40 }
 0x2d3   : > { %1090 = vrsqrt.f32 %v611_v43 }
 0x2dd   : > { %v1091_v47 = vpop.eup %1090 }
 0x2de   : > { %v613_v48 = vmul.f32 %v1091_v47, %v609_v44  ;;  %v614_v51 = vmul.f32 %v1091_v47, %v610_v46 }
 0x2e0   : > { %vm615_vm6 = vcmp.ge.f32.partialorder %v613_v48, 0.0  ;;  %vm616_vm7 = vcmp.ge.f32.partialorder %v614_v51, 0.0  ;;  %v618_v52 = vmul.f32 %v1553_v45, %v613_v48  ;;  %v619_v53 = vmul.f32 %v1553_v45, %v614_v51 }
 0x2e2   : > { %v1557_v54 = vsel %vm615_vm6, %v613_v48, %v618_v52  ;;  %v1559_v55 = vsel %vm616_vm7, %v614_v51, %v619_v53 }
 0x2e3   : > { %624 = vrot.lane.b32.xlu0 %v1559_v55, %s1227_s29  ;;  %628 = vrot.lane.b32.xlu1 %v1557_v54, %s1227_s29  ;;  %s1152_s29 = scalar_lea.vmem %s1682_s11, 128 }
 0x2e4   : > { %p1153_p6 = scmp.ne.s32.totalorder %s1682_s11, %s1152_s29 }
 0x2e6   : > { %p1154_p9 = pnand %p1153_p6, %p1357_p8 }
 0x2e7   : > { %640 = vrot.lane.b32.xlu0 %v1557_v54, %s1226_s27  ;;  %642 = vrot.lane.b32.xlu1 %v1559_v55, %s1226_s27  ;;  %s893_s27 = scalar_lea.sflag [#allocation5], %s1406_s8 }
 0x2e8   : > { %p1155_p12 = pneg %p1154_p9 }
 0x2eb   : > { %687 = vrot.lane.b32.xlu0 %v1559_v55, %s1228_s25  ;;  %690 = vrot.lane.b32.xlu1 %v1557_v54, %s1228_s25 }
 0x2ef   : > { %702 = vrot.lane.b32.xlu0 %v1557_v54, %s1229_s9  ;;  %704 = vrot.lane.b32.xlu1 %v1559_v55, %s1229_s9 }
 0x355   : > { %v625_v56 = vpop.permute.xlu0 %624  ;;  %v629_v57 = vpop.permute.xlu1 %628 }
 0x356   : > { %v630_v58 = vsel %vm266_vm1, %v629_v57, %v625_v56  ;;  %v633_v59 = vsel %vm266_vm1, %v625_v56, %v629_v57 }
 0x357   : > { %v634_v60 = vsub.f32 %v1557_v54, %v633_v59  ;;  %v635_v61 = vsub.f32 %v1559_v55, %v630_v58 }
 0x359   : > { %v636_v62 = vmul.f32 %v634_v60, %v1457_v32  ;;  %v637_v63 = vmul.f32 %v635_v61, %v1460_v37  ;;  %v641_v2 = vpop.permute.xlu0 %640  ;;  %v643_v3 = vpop.permute.xlu1 %642 }
 0x35a   : > { %v644_v4 = vsel %vm305_vm0, %v641_v2, %v643_v3  ;;  %v648_v5 = vsel %vm305_vm0, %v643_v3, %v641_v2 }
 0x35b   : > { %v1585_v6 = vadd.f32 %v636_v62, %v633_v59  ;;  %v1587_v7 = vadd.f32 %v637_v63, %v630_v58  ;;  %v649_v8 = vsub.f32 %v1557_v54, %v644_v4  ;;  %v650_v9 = vsub.f32 %v1559_v55, %v648_v5 }
 0x35d   : > { %660 = vrot.lane.b32.xlu1 %v1585_v6, %s1228_s25  ;;  %656 = vrot.lane.b32.xlu0 %v1587_v7, %s1228_s25  ;;  %v651_v32 = vmul.f32 %v649_v8, %v1464_v41  ;;  %v652_v37 = vmul.f32 %v650_v9, %v1466_v42  ;;  %v688_v41 = vpop.permute.xlu0 %687  ;;  %v691_v42 = vpop.permute.xlu1 %690  ;;  %v750_v51 = vrot.slane %v1587_v7, 4  ;;  %v749_v52 = vrot.slane %v1585_v6, 4 }
 0x35e   : > { %v692_v18 = vsel %vm347_vm2, %v691_v42, %v688_v41  ;;  %v695_v19 = vsel %vm347_vm2, %v688_v41, %v691_v42 }
 0x35f   : > { %v1601_v10 = vadd.f32 %v651_v32, %v644_v4  ;;  %v1603_v11 = vadd.f32 %v652_v37, %v648_v5  ;;  %v696_v49 = vsub.f32 %v1557_v54, %v695_v19  ;;  %v697_v50 = vsub.f32 %v1559_v55, %v692_v18 }
 0x361   : > { %674 = vrot.lane.b32.xlu1 %v1587_v7, %s1229_s9  ;;  %672 = vrot.lane.b32.xlu0 %v1585_v6, %s1229_s9  ;;  %v703_v12 = vpop.permute.xlu0 %702  ;;  %v705_v17 = vpop.permute.xlu1 %704  ;;  %v698_v26 = vmul.f32 %v696_v49, %v1445_v13  ;;  %v699_v27 = vmul.f32 %v697_v50, %v1447_v14  ;;  %v766_v63 = vrot.slane %v1603_v11, 4  ;;  %v765_v2 = vrot.slane %v1601_v10, 4 }
 0x362   : > { %v706_v20 = vsel %vm380_vm3, %v703_v12, %v705_v17  ;;  %v710_v21 = vsel %vm380_vm3, %v705_v17, %v703_v12 }
 0x363   : > { %v711_v22 = vsub.f32 %v1557_v54, %v706_v20  ;;  %v712_v23 = vsub.f32 %v1559_v55, %v710_v21  ;;  %v700_v40 = vadd.f32 %v698_v26, %v695_v19  ;;  %v701_v43 = vadd.f32 %v699_v27, %v692_v18 }
 0x365   : > { %718 = vrot.lane.b32.xlu0 %v1603_v11, %s1228_s25  ;;  %722 = vrot.lane.b32.xlu1 %v1601_v10, %s1228_s25  ;;  %v713_v33 = vmul.f32 %v711_v22, %v1449_v15  ;;  %v714_v34 = vmul.f32 %v712_v23, %v1451_v16  ;;  %v755_v3 = vrot.slane %v700_v40, 4  ;;  %v756_v4 = vrot.slane %v701_v43, 4  ;;  %s1158_s25 = scalar_lea.vmem %s1157_s15, 256 }
 0x366   : > { %p1160_p0 = scmp.lt.s32.totalorder %s1158_s25, %s1152_s29 }
 0x367   : > { %v715_v53 = vadd.f32 %v713_v33, %v706_v20  ;;  %v716_v56 = vadd.f32 %v714_v34, %v710_v21 }
 0x368   : > { %p1161_p5 = por %p1160_p0, %p1159_p13 }
 0x369   : > { %734 = vrot.lane.b32.xlu0 %v1601_v10, %s1229_s9  ;;  %736 = vrot.lane.b32.xlu1 %v1603_v11, %s1229_s9  ;;  %v761_v37 = vrot.slane %v715_v53, 4  ;;  %v762_v41 = vrot.slane %v716_v56, 4 }
 0x36a   : > { %p1162_p10 = pnand %p1161_p5, %p1155_p12 }
 0x3cf   : > { %v657_v24 = vpop.permute.xlu0 %656  ;;  %v661_v25 = vpop.permute.xlu1 %660 }
 0x3d0   : > { %v662_v28 = vsel %vm347_vm2, %v661_v25, %v657_v24  ;;  %v665_v29 = vsel %vm347_vm2, %v657_v24, %v661_v25 }
 0x3d1   : > { %v666_v30 = vsub.f32 %v1585_v6, %v665_v29  ;;  %v667_v31 = vsub.f32 %v1587_v7, %v662_v28 }
 0x3d3   : > { %v668_v35 = vmul.f32 %v666_v30, %v1445_v13  ;;  %v669_v36 = vmul.f32 %v667_v31, %v1447_v14  ;;  %v673_v38 = vpop.permute.xlu0 %672  ;;  %v675_v39 = vpop.permute.xlu1 %674  ;;  %v773_v30 = vsel %vm503_vm4, %v1557_v54, %v761_v37 }
 0x3d4   : > { %v676_v44 = vsel %vm380_vm3, %v673_v38, %v675_v39  ;;  %v680_v46 = vsel %vm380_vm3, %v675_v39, %v673_v38 }
 0x3d5   : > { %v681_v47 = vsub.f32 %v1585_v6, %v676_v44  ;;  %v682_v48 = vsub.f32 %v1587_v7, %v680_v46  ;;  %v670_v57 = vadd.f32 %v668_v35, %v665_v29  ;;  %v671_v58 = vadd.f32 %v669_v36, %v662_v28 }
 0x3d7   : > { %v683_v59 = vmul.f32 %v681_v47, %v1449_v15  ;;  %v684_v60 = vmul.f32 %v682_v48, %v1451_v16  ;;  %v719_v61 = vpop.permute.xlu0 %718  ;;  %v723_v62 = vpop.permute.xlu1 %722  ;;  %v770_v42 = vsel %vm503_vm4, %v671_v58, %v750_v51  ;;  %v769_v12 = vsel %vm503_vm4, %v670_v57, %v749_v52 }
 0x3d8   : > { %v724_v5 = vsel %vm347_vm2, %v723_v62, %v719_v61  ;;  %v727_v6 = vsel %vm347_vm2, %v719_v61, %v723_v62 }
 0x3d9   : > { %v685_v7 = vadd.f32 %v683_v59, %v676_v44  ;;  %v686_v8 = vadd.f32 %v684_v60, %v680_v46  ;;  %v728_v9 = vsub.f32 %v1601_v10, %v727_v6  ;;  %v729_v32 = vsub.f32 %v1603_v11, %v724_v5 }
 0x3db   : > { %v730_v17 = vmul.f32 %v728_v9, %v1445_v13  ;;  %v731_v18 = vmul.f32 %v729_v32, %v1447_v14  ;;  %v735_v19 = vpop.permute.xlu0 %734  ;;  %v737_v20 = vpop.permute.xlu1 %736  ;;  %v772_v21 = vsel %vm503_vm4, %v686_v8, %v756_v4  ;;  %v771_v49 = vsel %vm503_vm4, %v685_v7, %v755_v3 }
 0x3dc   : > { %v738_v50 = vsel %vm380_vm3, %v735_v19, %v737_v20  ;;  %v742_v22 = vsel %vm380_vm3, %v737_v20, %v735_v19  ;;  %v1019_v23 = vpack.c.bf16 %v772_v21, %v770_v42  ;;  %v1021_v24 = vpack.c.bf16 %v771_v49, %v769_v12 }
 0x3dd   : > { %v732_v25 = vadd.f32 %v730_v17, %v727_v6  ;;  %v733_v26 = vadd.f32 %v731_v18, %v724_v5  ;;  %v743_v27 = vsub.f32 %v1601_v10, %v738_v50  ;;  %v744_v13 = vsub.f32 %v1603_v11, %v742_v22  ;;  %v622_v11 = vld [vmem:[#allocation6] sm:$0xf] }
 0x3de   : > { %1020 = vmatprep.subr.bf16.mxu1 %v1019_v23  ;;  %v774_v14 = vsel %vm503_vm4, %v1559_v55, %v762_v41 }
 0x3df   : > { %v746_v28 = vmul.f32 %v744_v13, %v1451_v16  ;;  %1022 = vmatpush1.bf16.msra.mxu1 %v1021_v24  ;;  %v776_v29 = vsel %vm503_vm4, %v733_v26, %v766_v63  ;;  %v775_v31 = vsel %vm503_vm4, %v732_v25, %v765_v2  ;;  %v745_v10 = vmul.f32 %v743_v27, %v1449_v15 }
 0x3e0   : > { %v1023_v33 = vpack.c.bf16 %v776_v29, %v774_v14  ;;  %v1025_v34 = vpack.c.bf16 %v775_v31, %v773_v30 }
 0x3e1   : > { %v748_v35 = vadd.f32 %v746_v28, %v742_v22  ;;  %v747_v55 = vadd.f32 %v745_v10, %v738_v50 }
 0x3e2   : > { %1024 = vmatprep.subr.bf16.mxu1 %v1023_v33 }
 0x3e3   : > { %1026 = vmatpush1.bf16.msra.mxu1 %v1025_v34 }
 0x3e4   : > { %1001 = vmatprep.subr.msk.mxu1 %vm503_vm4, %v748_v35 }
 0x3e7   : > { %1002 = vmatpush1.msk.msra.mxu1 %vm503_vm4, %v747_v55 }
 0x3e8   : > { %1003 = vmatmul.mubr.msk.f32.vlgmr.msra.gmra.mrb[0].mxu1 %vm512_vm5, %v622_v11 }
 0x4bb   : > { %v852_v16 = vpop.f32.mrb[0].mxu1 }
 0x4bc   : > { %v862_v36 = vmul.f32 %v852_v16, %v852_v16  ;;  %v854_v54 = vpop.f32.mrb[1].mxu1  ;;  %v857_v38 = vsel %vm503_vm4, %v852_v16, 0.0 }
 0x4bd   : > { %v858_v39 = vsel %vm503_vm4, %v854_v54, 0.0  ;;  %v863_v40 = vmul.f32 %v854_v54, %v854_v54 }
 0x4be   : > { %v859_v15 = vadd.f32 %v858_v39, %v857_v38  ;;  %v864_v43 = vsel %vm503_vm4, %v862_v36, 0.0 }
 0x4bf   : > { %v865_v44 = vsel %vm503_vm4, %v863_v40, 0.0 }
 0x4c0   : > { %860 = vadd.xlane.f32.xlu0 %v859_v15  ;;  %v866_v46 = vadd.f32 %v865_v44, %v864_v43 }
 0x4c2   : > { %867 = vadd.xlane.f32.xlu1 %v866_v46 }
 0x54d   : > { %v861_v47 = vpop.xlane.xlu0 %860 }
 0x54e   : > { %v869_v48 = vmul.f32 0.00390625, %v861_v47 }
 0x54f   : > { %v868_v51 = vpop.xlane.xlu1 %867 }
 0x550   : > { %v870_v52 = vmul.f32 0.00390625, %v868_v51  ;;  %v871_v53 = vmul.f32 %v869_v48, %v869_v48  ;;  %v873_v58 = vsub.f32 %v852_v16, %v869_v48  ;;  %v874_v59 = vsub.f32 %v854_v54, %v869_v48 }
 0x552   : > { %v872_v56 = vsub.f32 %v870_v52, %v871_v53 }
 0x554   : > { %v875_v57 = vadd.f32 1e-05, %v872_v56 }
 0x556   : > { %1092 = vrsqrt.f32 %v875_v57 }
 0x560   : > { %v1093_v60 = vpop.eup %1092 }
 0x561   : > { %v877_v61 = vmul.f32 %v1093_v60, %v873_v58  ;;  %v878_v62 = vmul.f32 %v1093_v60, %v874_v59 }
 0x563   : > { %v879_v63 = vadd.f32 %v877_v61, %v1420_v0  ;;  %v880_v2 = vadd.f32 %v878_v62, %v1426_v1 }
 0x565   : > { %vm881_vm8 = vcmp.ge.f32.partialorder %v879_v63, 0.0  ;;  %vm882_vm9 = vcmp.ge.f32.partialorder %v880_v2, 0.0  ;;  %v883_v3 = vmul.f32 %v879_v63, %v1553_v45  ;;  %v884_v4 = vmul.f32 %v880_v2, %v1553_v45 }
 0x567   : > { %v885_v5 = vsel %vm881_vm8, %v879_v63, %v883_v3  ;;  %v886_v6 = vsel %vm882_vm9, %v880_v2, %v884_v4 }
 0x568   : > { %v889_v7 = vcombine.low %v885_v5, %v886_v6 }
 0x56a   : > { %891 = vst [vmem:[%s254_s10] sm:$0xff] %v889_v7 }
 0x56b   : > { %1165 = shalt.err (!%p1162_p10)
}
 0x56c   : > { %s1166_s8 = scalar_lea.hbm %s1680_s17, 128  ;;  %s1170_s14 = scalar_lea.hbm %s1729_s5, 256 }
 0x56d   : > { %p1167_p1 = scmp.ne.s32.totalorder %s1680_s17, %s1166_s8  ;;  %p1171_p3 = scmp.lt.u32.totalorder %s1680_s17, %s1729_s5 }
 0x56e   : > { %p1172_p11 = scmp.lt.u32.totalorder %s1170_s14, %s1166_s8  ;;  %p1174_p6 = scmp.lt.u32.totalorder %s1166_s8, %s1680_s17 }
 0x56f   : > { %p1168_p2 = pnand %p1167_p1, %p1357_p8 }
 0x570   : > { %p1173_p4 = por %p1172_p11, %p1171_p3 }
 0x571   : > { %p1169_p7 = pneg %p1168_p2 }
 0x572   : > { %p1175_p9 = por %p1174_p6, %p1173_p4 }
 0x574   : > { %p1176_p12 = pnand %p1175_p9, %p1169_p7 }
 0x576   : > { %1179 = shalt.err (!%p1176_p12)
}
 0x577   : > { %1033 = dma.vmem_to_hbm [thread:$0]  (%p1357_p8), %s1682_s11, 128, %s1680_s17, %s893_s27  }
 0x578 PF: > { %s919_s7 = sand.u32 1, %s1210_s20   ;;  %p1748_p13 = scmp.ne.s32.totalorder %s1734_s26, 0 }
 0x579   : > { %p1749_p0 = scmp.ge.s32.totalorder %s1222_s23, 2  ;;  %s920_s6 = scalar_lea.sflag [#allocation5], %s919_s7 }
 0x57b   : > { %p1044_p5 = pnand %p1749_p0, %p1748_p13 }
 0x57d   : > { %1205 = dma.done.wait (!%p1044_p5), %s920_s6, 128  }
 0x57e   : > { %1207 = vsyncadd (!%p1044_p5), %s920_s6, 4294967168  ;;  %p20_p10 = scmp.ge.s32.totalorder %s1313_s30, 4   ;;  %s1750_s20 = smov %s1214_s21 }
 0x57f   : > { %s1751_s21 = smov %s1218_s22  ;;  %s1752_s22 = smov %s1349_s24 }
 0x580   : > { %s1753_s23 = smov %s1313_s30  ;;  %22 = sbr.rel (!%p20_p10) target bundleno = 8 (0x8), region = 89 }
 0x587   :  { %925 = vsyncpa [#allocation4], 1 }
 0x588   :  { %927 = vsyncpa [#allocation4 + $0x1], 1 }
 0x589   :  { %928 = vsyncpa [#allocation7], 1 }
 0x58a   :  { %929 = vsyncpa [#allocation5], 1 }
 0x58b   :  { %931 = vsyncpa [#allocation5 + $0x1], 1 }

</bundles_post_ra>
